<compile_context>
chip_gen: v7x
topology: tpu7x:2x2x1
jax: 0.10.0
libtpu: 0.0.40
codegen_flags: <defaults>
</compile_context>

<pallas_src>
import functools

import jax
import jax.numpy as jnp
from jax.experimental import pallas as pl
from jax.experimental.pallas import tpu as pltpu


def _autoencoder_kernel(
    x_ref,
    w1_ref, b1_ref,
    w2_ref, b2_ref,
    w34_ref, b34_ref,   # folded bottleneck: (64,2)@(2,64) -> (64,64)
    w5_ref, b5_ref,
    w6_ref, b6_ref,
    o_ref,
):
    """Forward pass for one batch tile; weights are VMEM-resident across tiles."""
    x = x_ref[...]  # already float32; no cast needed

    # encoder (first two layers)
    h = jnp.dot(x, w1_ref[...], preferred_element_type=jnp.float32) + b1_ref[...]
    h = jnp.maximum(h, 0.0)
    h = jnp.dot(h, w2_ref[...], preferred_element_type=jnp.float32) + b2_ref[...]
    h = jnp.maximum(h, 0.0)

    # folded bottleneck (encoder L3 + decoder L1), then decoder ReLU
    h = jnp.dot(h, w34_ref[...], preferred_element_type=jnp.float32) + b34_ref[...]
    h = jnp.maximum(h, 0.0)

    # decoder (last two layers)
    h = jnp.dot(h, w5_ref[...], preferred_element_type=jnp.float32) + b5_ref[...]
    h = jnp.maximum(h, 0.0)
    y = jnp.dot(h, w6_ref[...], preferred_element_type=jnp.float32) + b6_ref[...]

    o_ref[...] = y.astype(o_ref.dtype)


def _resident_spec(shape):
    """Full-array block that stays in VMEM across all grid iterations."""
    return pl.BlockSpec(shape, lambda i: tuple(0 for _ in shape))


def _round_up(n, m):
    return ((n + m - 1) // m) * m


@functools.partial(jax.jit, static_argnames=("tb",))
def autoencoder_forward(x, params, *, tb=128):
    """x: [B, D] float32; params: dict of weights [in,out] and biases [1,out]."""
    B, D = x.shape
    dtype = jnp.float32

    # ---- fold the two bottleneck linear layers (no nonlinearity between them) ----
    w34 = jnp.dot(params["w3"], params["w4"], preferred_element_type=dtype)
    b34 = jnp.dot(params["b3"], params["w4"], preferred_element_type=dtype) + params["b4"]

    # ---- pad feature dim to a lane-dense multiple of 128 (in and out) ----
    D_pad = max(128, _round_up(D, 128))
    w1 = jnp.pad(params["w1"], ((0, D_pad - D), (0, 0)))     # [D_pad, 128]
    w6 = jnp.pad(params["w6"], ((0, 0), (0, D_pad - D)))     # [128, D_pad]
    b6 = jnp.pad(params["b6"], ((0, 0), (0, D_pad - D)))     # [1, D_pad]

    # ---- pad batch to a multiple of the tile size ----
    tb = min(tb, _round_up(B, 8))
    B_pad = _round_up(B, tb)
    x_p = jnp.pad(x, ((0, B_pad - B), (0, D_pad - D)))        # [B_pad, D_pad]

    weights = (
        w1, params["b1"],
        params["w2"], params["b2"],
        w34, b34,
        params["w5"], params["b5"],
        w6, b6,
    )

    grid = (B_pad // tb,)
    in_specs = [pl.BlockSpec((tb, D_pad), lambda i: (i, 0))]          # x: streamed
    in_specs += [_resident_spec(a.shape) for a in weights]            # params: resident
    out_spec = pl.BlockSpec((tb, D_pad), lambda i: (i, 0))

    out = pl.pallas_call(
        _autoencoder_kernel,
        out_shape=jax.ShapeDtypeStruct((B_pad, D_pad), dtype),
        grid_spec=pltpu.PrefetchScalarGridSpec(
            num_scalar_prefetch=0,
            grid=grid,
            in_specs=in_specs,
            out_specs=out_spec,
        ),
        compiler_params=pltpu.CompilerParams(
            dimension_semantics=("parallel",),   # v7x: shard batch tiles over 2 TCs
        ),
    )(x_p, *weights)

    return out[:B, :D]


def init_params(key, d_in):
    """Deterministic init mimicking nn.Linear default (uniform +/- 1/sqrt(fan_in))."""
    dims = [(d_in, 128), (128, 64), (64, 2),    # encoder
            (2, 64), (64, 128), (128, d_in)]    # decoder
    params = {}
    keys = jax.random.split(key, 2 * len(dims))
    for i, (fan_in, fan_out) in enumerate(dims):
        bound = 1.0 / jnp.sqrt(jnp.float32(fan_in))
        w = jax.random.uniform(keys[2 * i], (fan_in, fan_out), jnp.float32, -bound, bound)
        b = jax.random.uniform(keys[2 * i + 1], (1, fan_out), jnp.float32, -bound, bound)
        params[f"w{i + 1}"] = w
        params[f"b{i + 1}"] = b
    return params


def reference_forward(x, params):
    """Plain-JAX reference of the unfused forward pass (sanity check)."""
    h = jnp.maximum(x @ params["w1"] + params["b1"], 0.0)
    h = jnp.maximum(h @ params["w2"] + params["b2"], 0.0)
    z = h @ params["w3"] + params["b3"]
    h = jnp.maximum(z @ params["w4"] + params["b4"], 0.0)
    h = jnp.maximum(h @ params["w5"] + params["b5"], 0.0)
    return h @ params["w6"] + params["b6"]


if __name__ == "__main__":
    key = jax.random.PRNGKey(0)
    k_param, k_x = jax.random.split(key)

    # X.shape[1] == number of centroids (square distance matrix); small D, with
    # enough batch rows to exercise the tiled/pipelined grid (2 tiles of 128).
    D = 8
    B = 256
    params = init_params(k_param, D)
    x = jax.random.normal(k_x, (B, D), jnp.float32)

    out = autoencoder_forward(x, params, tb=128)
    out = jax.block_until_ready(out)

    ref = reference_forward(x, params)
    assert out.shape == (B, D)
    assert jnp.allclose(out, ref, atol=1e-4, rtol=1e-4), "mismatch vs reference"

    print("KERNEL_OK")
</pallas_src>

<mosaic_0001>
module attributes {stable_mosaic.version = 11 : i64} {
  func.func @_autoencoder_kernel(%arg0: i32, %arg1: memref<128x128xf32, #tpu.memory_space<vmem>>, %arg2: memref<128x128xf32, #tpu.memory_space<vmem>>, %arg3: memref<1x128xf32, #tpu.memory_space<vmem>>, %arg4: memref<128x64xf32, #tpu.memory_space<vmem>>, %arg5: memref<1x64xf32, #tpu.memory_space<vmem>>, %arg6: memref<64x64xf32, #tpu.memory_space<vmem>>, %arg7: memref<1x64xf32, #tpu.memory_space<vmem>>, %arg8: memref<64x128xf32, #tpu.memory_space<vmem>>, %arg9: memref<1x128xf32, #tpu.memory_space<vmem>>, %arg10: memref<128x128xf32, #tpu.memory_space<vmem>>, %arg11: memref<1x128xf32, #tpu.memory_space<vmem>>, %arg12: memref<128x128xf32, #tpu.memory_space<vmem>>) attributes {dimension_semantics = [#tpu.dimension_semantics<parallel>], iteration_bounds = array<i64: 2>, scalar_prefetch = 0 : i64, scratch_operands = 0 : i64, tpu.core_type = #tpu.core_type<tc>, window_params = [{transform_indices = @transform_0, window_bounds = array<i64: 128, 128>}, {pipeline_mode = #tpu.pipeline_mode<synchronous>, transform_indices = @transform_1, window_bounds = array<i64: 128, 128>}, {pipeline_mode = #tpu.pipeline_mode<synchronous>, transform_indices = @transform_2, window_bounds = array<i64: 1, 128>}, {pipeline_mode = #tpu.pipeline_mode<synchronous>, transform_indices = @transform_3, window_bounds = array<i64: 128, 64>}, {pipeline_mode = #tpu.pipeline_mode<synchronous>, transform_indices = @transform_4, window_bounds = array<i64: 1, 64>}, {pipeline_mode = #tpu.pipeline_mode<synchronous>, transform_indices = @transform_5, window_bounds = array<i64: 64, 64>}, {pipeline_mode = #tpu.pipeline_mode<synchronous>, transform_indices = @transform_6, window_bounds = array<i64: 1, 64>}, {pipeline_mode = #tpu.pipeline_mode<synchronous>, transform_indices = @transform_7, window_bounds = array<i64: 64, 128>}, {pipeline_mode = #tpu.pipeline_mode<synchronous>, transform_indices = @transform_8, window_bounds = array<i64: 1, 128>}, {pipeline_mode = #tpu.pipeline_mode<synchronous>, transform_indices = @transform_9, window_bounds = array<i64: 128, 128>}, {pipeline_mode = #tpu.pipeline_mode<synchronous>, transform_indices = @transform_10, window_bounds = array<i64: 1, 128>}, {transform_indices = @transform_11, window_bounds = array<i64: 128, 128>}]} {
    %c0 = arith.constant 0 : index
    %c0_0 = arith.constant 0 : index
    %0 = vector.load %arg1[%c0, %c0_0] : memref<128x128xf32, #tpu.memory_space<vmem>>, vector<128x128xf32>
    %c0_1 = arith.constant 0 : index
    %c0_2 = arith.constant 0 : index
    %1 = vector.load %arg2[%c0_1, %c0_2] : memref<128x128xf32, #tpu.memory_space<vmem>>, vector<128x128xf32>
    %cst = arith.constant dense<0.000000e+00> : vector<128x128xf32>
    %2 = tpu.matmul %0, %1, %cst {dimension_numbers = #tpu.dot_dimension_numbers<[1], [0], [0], [1], [0, 0, 1, 1], [], []>} : vector<128x128xf32>, vector<128x128xf32>, vector<128x128xf32> -> vector<128x128xf32>
    %c0_3 = arith.constant 0 : index
    %c0_4 = arith.constant 0 : index
    %3 = vector.load %arg3[%c0_3, %c0_4] : memref<1x128xf32, #tpu.memory_space<vmem>>, vector<1x128xf32>
    %4 = vector.broadcast %3 : vector<1x128xf32> to vector<128x128xf32>
    %5 = arith.addf %2, %4 : vector<128x128xf32>
    %cst_5 = arith.constant 0.000000e+00 : f32
    %6 = vector.broadcast %cst_5 : f32 to vector<128x128xf32>
    %7 = arith.maximumf %5, %6 : vector<128x128xf32>
    %c0_6 = arith.constant 0 : index
    %c0_7 = arith.constant 0 : index
    %8 = vector.load %arg4[%c0_6, %c0_7] : memref<128x64xf32, #tpu.memory_space<vmem>>, vector<128x64xf32>
    %cst_8 = arith.constant dense<0.000000e+00> : vector<128x64xf32>
    %9 = tpu.matmul %7, %8, %cst_8 {dimension_numbers = #tpu.dot_dimension_numbers<[1], [0], [0], [1], [0, 0, 1, 1], [], []>} : vector<128x128xf32>, vector<128x64xf32>, vector<128x64xf32> -> vector<128x64xf32>
    %c0_9 = arith.constant 0 : index
    %c0_10 = arith.constant 0 : index
    %10 = vector.load %arg5[%c0_9, %c0_10] : memref<1x64xf32, #tpu.memory_space<vmem>>, vector<1x64xf32>
    %11 = vector.broadcast %10 : vector<1x64xf32> to vector<128x64xf32>
    %12 = arith.addf %9, %11 : vector<128x64xf32>
    %cst_11 = arith.constant 0.000000e+00 : f32
    %13 = vector.broadcast %cst_11 : f32 to vector<128x64xf32>
    %14 = arith.maximumf %12, %13 : vector<128x64xf32>
    %c0_12 = arith.constant 0 : index
    %c0_13 = arith.constant 0 : index
    %15 = vector.load %arg6[%c0_12, %c0_13] : memref<64x64xf32, #tpu.memory_space<vmem>>, vector<64x64xf32>
    %cst_14 = arith.constant dense<0.000000e+00> : vector<128x64xf32>
    %16 = tpu.matmul %14, %15, %cst_14 {dimension_numbers = #tpu.dot_dimension_numbers<[1], [0], [0], [1], [0, 0, 1, 1], [], []>} : vector<128x64xf32>, vector<64x64xf32>, vector<128x64xf32> -> vector<128x64xf32>
    %c0_15 = arith.constant 0 : index
    %c0_16 = arith.constant 0 : index
    %17 = vector.load %arg7[%c0_15, %c0_16] : memref<1x64xf32, #tpu.memory_space<vmem>>, vector<1x64xf32>
    %18 = vector.broadcast %17 : vector<1x64xf32> to vector<128x64xf32>
    %19 = arith.addf %16, %18 : vector<128x64xf32>
    %cst_17 = arith.constant 0.000000e+00 : f32
    %20 = vector.broadcast %cst_17 : f32 to vector<128x64xf32>
    %21 = arith.maximumf %19, %20 : vector<128x64xf32>
    %c0_18 = arith.constant 0 : index
    %c0_19 = arith.constant 0 : index
    %22 = vector.load %arg8[%c0_18, %c0_19] : memref<64x128xf32, #tpu.memory_space<vmem>>, vector<64x128xf32>
    %cst_20 = arith.constant dense<0.000000e+00> : vector<128x128xf32>
    %23 = tpu.matmul %21, %22, %cst_20 {dimension_numbers = #tpu.dot_dimension_numbers<[1], [0], [0], [1], [0, 0, 1, 1], [], []>} : vector<128x64xf32>, vector<64x128xf32>, vector<128x128xf32> -> vector<128x128xf32>
    %c0_21 = arith.constant 0 : index
    %c0_22 = arith.constant 0 : index
    %24 = vector.load %arg9[%c0_21, %c0_22] : memref<1x128xf32, #tpu.memory_space<vmem>>, vector<1x128xf32>
    %25 = vector.broadcast %24 : vector<1x128xf32> to vector<128x128xf32>
    %26 = arith.addf %23, %25 : vector<128x128xf32>
    %cst_23 = arith.constant 0.000000e+00 : f32
    %27 = vector.broadcast %cst_23 : f32 to vector<128x128xf32>
    %28 = arith.maximumf %26, %27 : vector<128x128xf32>
    %c0_24 = arith.constant 0 : index
    %c0_25 = arith.constant 0 : index
    %29 = vector.load %arg10[%c0_24, %c0_25] : memref<128x128xf32, #tpu.memory_space<vmem>>, vector<128x128xf32>
    %cst_26 = arith.constant dense<0.000000e+00> : vector<128x128xf32>
    %30 = tpu.matmul %28, %29, %cst_26 {dimension_numbers = #tpu.dot_dimension_numbers<[1], [0], [0], [1], [0, 0, 1, 1], [], []>} : vector<128x128xf32>, vector<128x128xf32>, vector<128x128xf32> -> vector<128x128xf32>
    %c0_27 = arith.constant 0 : index
    %c0_28 = arith.constant 0 : index
    %31 = vector.load %arg11[%c0_27, %c0_28] : memref<1x128xf32, #tpu.memory_space<vmem>>, vector<1x128xf32>
    %32 = vector.broadcast %31 : vector<1x128xf32> to vector<128x128xf32>
    %33 = arith.addf %30, %32 : vector<128x128xf32>
    %c0_29 = arith.constant 0 : index
    %c0_30 = arith.constant 0 : index
    %34 = vector.load %arg12[%c0_29, %c0_30] : memref<128x128xf32, #tpu.memory_space<vmem>>, vector<128x128xf32>
    tpu.vector_store %arg12[%c0_29, %c0_30], %33 {strides = array<i32>} : memref<128x128xf32, #tpu.memory_space<vmem>>, vector<128x128xf32>,
    return
  }
  func.func @transform_0(%arg0: i32) -> (i32, i32) {
    %c0_i32 = arith.constant 0 : i32
    %c0_i32_0 = arith.constant 0 : i32
    return %arg0, %c0_i32 : i32, i32
  }
  func.func @transform_1(%arg0: i32) -> (i32, i32) {
    %c0_i32 = arith.constant 0 : i32
    %c0_i32_0 = arith.constant 0 : i32
    %c0_i32_1 = arith.constant 0 : i32
    return %c0_i32, %c0_i32_0 : i32, i32
  }
  func.func @transform_2(%arg0: i32) -> (i32, i32) {
    %c0_i32 = arith.constant 0 : i32
    %c0_i32_0 = arith.constant 0 : i32
    %c0_i32_1 = arith.constant 0 : i32
    return %c0_i32, %c0_i32_0 : i32, i32
  }
  func.func @transform_3(%arg0: i32) -> (i32, i32) {
    %c0_i32 = arith.constant 0 : i32
    %c0_i32_0 = arith.constant 0 : i32
    %c0_i32_1 = arith.constant 0 : i32
    return %c0_i32, %c0_i32_0 : i32, i32
  }
  func.func @transform_4(%arg0: i32) -> (i32, i32) {
    %c0_i32 = arith.constant 0 : i32
    %c0_i32_0 = arith.constant 0 : i32
    %c0_i32_1 = arith.constant 0 : i32
    return %c0_i32, %c0_i32_0 : i32, i32
  }
  func.func @transform_5(%arg0: i32) -> (i32, i32) {
    %c0_i32 = arith.constant 0 : i32
    %c0_i32_0 = arith.constant 0 : i32
    %c0_i32_1 = arith.constant 0 : i32
    return %c0_i32, %c0_i32_0 : i32, i32
  }
  func.func @transform_6(%arg0: i32) -> (i32, i32) {
    %c0_i32 = arith.constant 0 : i32
    %c0_i32_0 = arith.constant 0 : i32
    %c0_i32_1 = arith.constant 0 : i32
    return %c0_i32, %c0_i32_0 : i32, i32
  }
  func.func @transform_7(%arg0: i32) -> (i32, i32) {
    %c0_i32 = arith.constant 0 : i32
    %c0_i32_0 = arith.constant 0 : i32
    %c0_i32_1 = arith.constant 0 : i32
    return %c0_i32, %c0_i32_0 : i32, i32
  }
  func.func @transform_8(%arg0: i32) -> (i32, i32) {
    %c0_i32 = arith.constant 0 : i32
    %c0_i32_0 = arith.constant 0 : i32
    %c0_i32_1 = arith.constant 0 : i32
    return %c0_i32, %c0_i32_0 : i32, i32
  }
  func.func @transform_9(%arg0: i32) -> (i32, i32) {
    %c0_i32 = arith.constant 0 : i32
    %c0_i32_0 = arith.constant 0 : i32
    %c0_i32_1 = arith.constant 0 : i32
    return %c0_i32, %c0_i32_0 : i32, i32
  }
  func.func @transform_10(%arg0: i32) -> (i32, i32) {
    %c0_i32 = arith.constant 0 : i32
    %c0_i32_0 = arith.constant 0 : i32
    %c0_i32_1 = arith.constant 0 : i32
    return %c0_i32, %c0_i32_0 : i32, i32
  }
  func.func @transform_11(%arg0: i32) -> (i32, i32) {
    %c0_i32 = arith.constant 0 : i32
    %c0_i32_0 = arith.constant 0 : i32
    return %arg0, %c0_i32 : i32, i32
  }
}

</mosaic_0001>

<bundles_post_ra>
// kernel: autoencoder_forward.1
= control target key start
LH: loop header
LB: loop body
LE: loop exit
PB: predicated region body
PF: predicated region fallthrough
CT: control target
= control target key end

     0   :  { %s2123_s17 = smov 0   ;;  %s2464_s0 = inlined_call_operand.vmem [shape: f32[256,128], index: 0, kind: input, shape index: {}]   ;;  %s2465_s1 = inlined_call_operand.vmem [shape: f32[128,128], index: 1, kind: input, shape index: {}]   ;;  %s2466_s2 = inlined_call_operand.vmem [shape: f32[1,128], index: 2, kind: input, shape index: {}]   ;;  %s2467_s3 = inlined_call_operand.vmem [shape: f32[128,64], index: 3, kind: input, shape index: {}]   ;;  %s2468_s4 = inlined_call_operand.vmem [shape: f32[1,64], index: 4, kind: input, shape index: {}]   ;;  %s2469_s5 = inlined_call_operand.vmem [shape: f32[64,64], index: 5, kind: input, shape index: {}]   ;;  %s2470_s6 = inlined_call_operand.vmem [shape: f32[1,64], index: 6, kind: input, shape index: {}]   ;;  %s2471_s7 = inlined_call_operand.vmem [shape: f32[64,128], index: 7, kind: input, shape index: {}]   ;;  %s2472_s8 = inlined_call_operand.vmem [shape: f32[1,128], index: 8, kind: input, shape index: {}]   ;;  %s2473_s9 = inlined_call_operand.vmem [shape: f32[128,128], index: 9, kind: input, shape index: {}]   ;;  %s2474_s10 = inlined_call_operand.vmem [shape: f32[1,128], index: 10, kind: input, shape index: {}]   ;;  %s2475_s11 = inlined_call_operand.vmem [shape: f32[256,128], index: 11, kind: output, shape index: {}]  }
   0x1 LB: > { %s1463_s18 = sadd.s32 4294967295, %s2061_s17   ;;  %p1467_p0 = scmp.ge.s32.totalorder %s2061_s17, 1  ;;  %s2061_s17 = sphi %s2123_s17, %s21_s17  }
   0x2   : > { %p338_p1 = scmp.lt.s32.totalorder %s2061_s17, 3 }
   0x4   : > { %p339_p2 = pnand %p1467_p0, %p338_p1 }
   0x5   : > { %v406_v0 = vld [vmem:[%s2465_s1] sm:$0xff] (!%p339_p2)  ;;  %v407_v1 = vld [vmem:[%s2465_s1 + $0x8] sm:$0xff] (!%p339_p2)  ;;  %v408_v2 = vld [vmem:[%s2465_s1 + $0x10] sm:$0xff] (!%p339_p2)  ;;  %s1468_s25 = sshll.u32 (!%p339_p2), %s1463_s18, 4  ;;  %vm789_vm0 = vcmask (!%p339_p2), 523264  }
   0x6   : > { %342 = sbr.rel (%p339_p2) target bundleno = 1156 (0x484), region = 64  ;;  %v1903_v3 = vpack.c.bf16 (!%p339_p2), %v407_v1, %v406_v0  ;;  %v409_v4 = vld [vmem:[%s2465_s1 + $0x18] sm:$0xff] (!%p339_p2)  ;;  %p379_p3 = scmp.lt.s32.totalorder (!%p339_p2), %s1468_s25, 31  ;;  %v410_v6 = vld [vmem:[%s2465_s1 + $0x20] sm:$0xff] (!%p339_p2)  ;;  %v411_v7 = vld [vmem:[%s2465_s1 + $0x28] sm:$0xff] (!%p339_p2) }
   0x7   : > { %v1907_v5 = vpack.c.bf16 (!%p339_p2), %v409_v4, %v408_v2  ;;  %v1911_v8 = vpack.c.bf16 (!%p339_p2), %v411_v7, %v410_v6  ;;  %v412_v9 = vld [vmem:[%s2465_s1 + $0x30] sm:$0xff] (!%p339_p2)  ;;  %v590_v10 = vld [vmem:[%s2467_s3] sm:$0xff] (!%p339_p2)  ;;  %v591_v11 = vld [vmem:[%s2467_s3 + $0x8] sm:$0xff] (!%p339_p2) }
   0x8   : > { %1904 = vmatprep.subr.bf16.mxu0 (!%p339_p2), %v1903_v3  ;;  %v413_v12 = vld [vmem:[%s2465_s1 + $0x38] sm:$0xff] (!%p339_p2)  ;;  %v1935_v13 = vpack.c.bf16 (!%p339_p2), %v591_v11, %v590_v10  ;;  %v592_v14 = vld [vmem:[%s2467_s3 + $0x10] sm:$0xff] (!%p339_p2)  ;;  %v414_v19 = vld [vmem:[%s2465_s1 + $0x40] sm:$0xff] (!%p339_p2) }
   0x9   : > { %1906 = vmatpush3.bf16.msra.mxu0 (!%p339_p2), %v1903_v3  ;;  %v593_v15 = vld [vmem:[%s2467_s3 + $0x18] sm:$0xff] (!%p339_p2)  ;;  %v1915_v18 = vpack.c.bf16 (!%p339_p2), %v413_v12, %v412_v9  ;;  %v415_v20 = vld [vmem:[%s2465_s1 + $0x48] sm:$0xff] (!%p339_p2)  ;;  %v594_v21 = vld [vmem:[%s2467_s3 + $0x20] sm:$0xff] (!%p339_p2) }
   0xa   : > { %1908 = vmatprep.subr.bf16.mxu0 (!%p339_p2), %v1907_v5  ;;  %v1939_v17 = vpack.c.bf16 (!%p339_p2), %v593_v15, %v592_v14  ;;  %1936 = vmatprep.subr.bf16.mxu1 (!%p339_p2), %v1935_v13  ;;  %v595_v22 = vld [vmem:[%s2467_s3 + $0x28] sm:$0xff] (!%p339_p2)  ;;  %v596_v23 = vld [vmem:[%s2467_s3 + $0x30] sm:$0xff] (!%p339_p2)  ;;  %v1919_v24 = vpack.c.bf16 (!%p339_p2), %v415_v20, %v414_v19  ;;  %v597_v26 = vld [vmem:[%s2467_s3 + $0x38] sm:$0xff] (!%p339_p2) }
   0xb   : > { %1938 = vmatpush3.bf16.msra.mxu1 (!%p339_p2), %v1935_v13  ;;  %v1943_v25 = vpack.c.bf16 (!%p339_p2), %v595_v22, %v594_v21  ;;  %v416_v27 = vld [vmem:[%s2465_s1 + $0x50] sm:$0xff] (!%p339_p2)  ;;  %v417_v28 = vld [vmem:[%s2465_s1 + $0x58] sm:$0xff] (!%p339_p2)  ;;  %v1947_v29 = vpack.c.bf16 (!%p339_p2), %v597_v26, %v596_v23  ;;  %v598_v30 = vld [vmem:[%s2467_s3 + $0x40] sm:$0xff] (!%p339_p2) }
   0xc   : > { %1940 = vmatprep.subr.bf16.mxu1 (!%p339_p2), %v1939_v17  ;;  %v599_v31 = vld [vmem:[%s2467_s3 + $0x48] sm:$0xff] (!%p339_p2)  ;;  %v1923_v32 = vpack.c.bf16 (!%p339_p2), %v417_v28, %v416_v27  ;;  %v418_v33 = vld [vmem:[%s2465_s1 + $0x60] sm:$0xff] (!%p339_p2)  ;;  %v600_v36 = vld [vmem:[%s2467_s3 + $0x50] sm:$0xff] (!%p339_p2) }
   0xd   : > { %s2477_s25 = smov (!%p379_p3, %s1468_s25), 31  ;;  %1910 = vmatpush3.bf16.msra.mxu0 %v1907_v5  ;;  %v419_v34 = vld [vmem:[%s2465_s1 + $0x68] sm:$0xff]  ;;  %v1951_v35 = vpack.c.bf16 %v599_v31, %v598_v30  ;;  %v601_v37 = vld [vmem:[%s2467_s3 + $0x58] sm:$0xff]  ;;  %v420_v39 = vld [vmem:[%s2465_s1 + $0x70] sm:$0xff] }
   0xe   : > { %s1469_s15 = sshll.u32 %s2477_s25, 3  ;;  %1912 = vmatprep.subr.bf16.mxu0 %v1911_v8  ;;  %v1927_v38 = vpack.c.bf16 %v419_v34, %v418_v33  ;;  %v421_v40 = vld [vmem:[%s2465_s1 + $0x78] sm:$0xff]  ;;  %v1955_v41 = vpack.c.bf16 %v601_v37, %v600_v36  ;;  %v602_v42 = vld [vmem:[%s2467_s3 + $0x60] sm:$0xff]  ;;  %v603_v43 = vld [vmem:[%s2467_s3 + $0x68] sm:$0xff] }
   0xf   : > { %s2169_s26 = scalar_lea.vmem %s2464_s0, %s1469_s15  ;;  %1942 = vmatpush3.bf16.msra.mxu1 %v1939_v17  ;;  %v1931_v44 = vpack.c.bf16 %v421_v40, %v420_v39  ;;  %v1959_v45 = vpack.c.bf16 %v603_v43, %v602_v42  ;;  %v604_v61 = vld [vmem:[%s2467_s3 + $0x70] sm:$0xff]  ;;  %v605_v62 = vld [vmem:[%s2467_s3 + $0x78] sm:$0xff]  ;;  %v774_v0 = vld [vmem:[%s2469_s5] sm:$0xff]  ;;  %s2443_s20 = scalar_lea.vmem %s2475_s11, %s1469_s15 }
  0x10   : > { %v390_v16 = vld [vmem:[%s2169_s26] sm:$0xff]  ;;  %1944 = vmatprep.subr.bf16.mxu1 %v1943_v25  ;;  %v391_v46 = vld [vmem:[%s2169_s26 + $0x8] sm:$0xff]  ;;  %v392_v47 = vld [vmem:[%s2169_s26 + $0x10] sm:$0xff]  ;;  %v1963_v63 = vpack.c.bf16 %v605_v62, %v604_v61 }
  0x11   : > { %1687 = vmatprep.mubr.f32.mxu0 %v390_v16  ;;  %1914 = vmatpush3.bf16.msra.mxu0 %v1911_v8  ;;  %v393_v48 = vld [vmem:[%s2169_s26 + $0x18] sm:$0xff]  ;;  %v394_v49 = vld [vmem:[%s2169_s26 + $0x20] sm:$0xff]  ;;  %v395_v50 = vld [vmem:[%s2169_s26 + $0x28] sm:$0xff] }
  0x12   : > { %1916 = vmatprep.subr.bf16.mxu0 %v1915_v18  ;;  %v396_v51 = vld [vmem:[%s2169_s26 + $0x30] sm:$0xff]  ;;  %v397_v52 = vld [vmem:[%s2169_s26 + $0x38] sm:$0xff]  ;;  %v398_v53 = vld [vmem:[%s2169_s26 + $0x40] sm:$0xff] }
  0x13   : > { %1946 = vmatpush3.bf16.msra.mxu1 %v1943_v25  ;;  %v399_v54 = vld [vmem:[%s2169_s26 + $0x48] sm:$0xff]  ;;  %v400_v55 = vld [vmem:[%s2169_s26 + $0x50] sm:$0xff]  ;;  %v401_v56 = vld [vmem:[%s2169_s26 + $0x58] sm:$0xff] }
  0x14   : > { %1948 = vmatprep.subr.bf16.mxu1 %v1947_v29  ;;  %v402_v57 = vld [vmem:[%s2169_s26 + $0x60] sm:$0xff]  ;;  %v403_v58 = vld [vmem:[%s2169_s26 + $0x68] sm:$0xff]  ;;  %v404_v59 = vld [vmem:[%s2169_s26 + $0x70] sm:$0xff] }
  0x15   : > { %1918 = vmatpush3.bf16.msra.mxu0 %v1915_v18  ;;  %v405_v60 = vld [vmem:[%s2169_s26 + $0x78] sm:$0xff]  ;;  %v775_v1 = vld [vmem:[%s2469_s5 + $0x8] sm:$0xff]  ;;  %v776_v2 = vld [vmem:[%s2469_s5 + $0x10] sm:$0xff] }
  0x16   : > { %1920 = vmatprep.subr.bf16.mxu0 %v1919_v24  ;;  %v1967_v3 = vpack.c.bf16 %v775_v1, %v774_v0  ;;  %v777_v4 = vld [vmem:[%s2469_s5 + $0x18] sm:$0xff]  ;;  %v778_v6 = vld [vmem:[%s2469_s5 + $0x20] sm:$0xff]  ;;  %v779_v7 = vld [vmem:[%s2469_s5 + $0x28] sm:$0xff] }
  0x17   : > { %1950 = vmatpush3.bf16.msra.mxu1 %v1947_v29  ;;  %v1971_v5 = vpack.c.bf16 %v777_v4, %v776_v2  ;;  %v1975_v8 = vpack.c.bf16 %v779_v7, %v778_v6  ;;  %v780_v9 = vld [vmem:[%s2469_s5 + $0x30] sm:$0xff]  ;;  %v781_v10 = vld [vmem:[%s2469_s5 + $0x38] sm:$0xff]  ;;  %v1472_v12 = vld [vmem:[%s2466_s2] ss:$0 sm:$0xff] }
  0x18   : > { %1952 = vmatprep.subr.bf16.mxu1 %v1951_v35  ;;  %v1979_v11 = vpack.c.bf16 %v781_v10, %v780_v9  ;;  %v999_v61 = vld [vmem:[%s2471_s7] sm:$0xff]  ;;  %v1000_v62 = vld [vmem:[%s2471_s7 + $0x8] sm:$0xff]  ;;  %v1002_v1 = vld [vmem:[%s2471_s7 + $0x18] sm:$0xff] }
  0x19   : > { %1922 = vmatpush3.bf16.msra.mxu0 %v1919_v24  ;;  %v1983_v0 = vpack.c.bf16 %v1000_v62, %v999_v61  ;;  %v1004_v4 = vld [vmem:[%s2471_s7 + $0x28] sm:$0xff]  ;;  %v1005_v6 = vld [vmem:[%s2471_s7 + $0x30] sm:$0xff]  ;;  %v1006_v7 = vld [vmem:[%s2471_s7 + $0x38] sm:$0xff] }
  0x1a   : > { %1924 = vmatprep.subr.bf16.mxu0 %v1923_v32  ;;  %v1473_v9 = vld [vmem:[%s2468_s4] ss:$0 sm:$0xff]  ;;  %v1226_v62 = vld [vmem:[%s2473_s9 + $0x18] sm:$0xff] }
  0x1b   : > { %1954 = vmatpush3.bf16.msra.mxu1 %v1951_v35 }
  0x1c   : > { %1956 = vmatprep.subr.bf16.mxu1 %v1955_v41 }
  0x1d   : > { %1926 = vmatpush3.bf16.msra.mxu0 %v1923_v32 }
  0x1e   : > { %1928 = vmatprep.subr.bf16.mxu0 %v1927_v38 }
  0x1f   : > { %1958 = vmatpush3.bf16.msra.mxu1 %v1955_v41 }
  0x20   : > { %1960 = vmatprep.subr.bf16.mxu1 %v1959_v45 }
  0x21   : > { %1930 = vmatpush3.bf16.msra.mxu0 %v1927_v38 }
  0x22   : > { %1932 = vmatprep.subr.bf16.mxu0 %v1931_v44 }
  0x23   : > { %1962 = vmatpush3.bf16.msra.mxu1 %v1959_v45 }
  0x24   : > { %1964 = vmatprep.subr.bf16.mxu1 %v1963_v63 }
  0x25   : > { %1934 = vmatpush3.bf16.msra.mxu0 %v1931_v44 }
  0x26   : > { %1968 = vmatprep.subr.bf16.mxu0 %v1967_v3 }
  0x27   : > { %1966 = vmatpush3.bf16.msra.mxu1 %v1963_v63  ;;  %v1001_v63 = vld [vmem:[%s2471_s7 + $0x10] sm:$0xff] }
  0x28   : > { %1688 = vmatmul.mubr.f32.vlgmr.msra.gmra.mrb[0].mxu0 %v391_v46  ;;  %v1987_v2 = vpack.c.bf16 %v1002_v1, %v1001_v63  ;;  %1984 = vmatprep.subr.bf16.mxu1 %v1983_v0  ;;  %v1228_v1 = vld [vmem:[%s2473_s9 + $0x28] sm:$0xff] }
  0x29   : > { %1690 = vmatprep.mubr.f32.mxu0 %v392_v47  ;;  %1970 = vmatpush3.bf16.msra.mxu0 %v1967_v3  ;;  %v1003_v3 = vld [vmem:[%s2471_s7 + $0x20] sm:$0xff] }
  0x2a   : > { %1972 = vmatprep.subr.bf16.mxu0 %v1971_v5 }
  0x2c   : > { %1691 = vmatmul.mubr.f32.gmra.mrb[2].mxu0 %v393_v48 }
  0x2d   : > { %1693 = vmatprep.mubr.f32.mxu0 %v394_v49  ;;  %1974 = vmatpush3.bf16.msra.mxu0 %v1971_v5  ;;  %v1991_v5 = vpack.c.bf16 %v1004_v4, %v1003_v3  ;;  %v1229_v3 = vld [vmem:[%s2473_s9 + $0x30] sm:$0xff]  ;;  %v1230_v4 = vld [vmem:[%s2473_s9 + $0x38] sm:$0xff] }
  0x2e   : > { %1976 = vmatprep.subr.bf16.mxu0 %v1975_v8 }
  0x30   : > { %1694 = vmatmul.mubr.f32.gmra.mrb[4].mxu0 %v395_v50 }
  0x31   : > { %1696 = vmatprep.mubr.f32.mxu0 %v396_v51  ;;  %1978 = vmatpush3.bf16.msra.mxu0 %v1975_v8  ;;  %v1995_v8 = vpack.c.bf16 %v1006_v7, %v1005_v6  ;;  %v1231_v6 = vld [vmem:[%s2473_s9 + $0x40] sm:$0xff]  ;;  %v1232_v7 = vld [vmem:[%s2473_s9 + $0x48] sm:$0xff] }
  0x32   : > { %1980 = vmatprep.subr.bf16.mxu0 %v1979_v11 }
  0x34   : > { %1697 = vmatmul.mubr.f32.gmra.mrb[6].mxu0 %v397_v52 }
  0x35   : > { %1699 = vmatprep.mubr.f32.mxu0 %v398_v53  ;;  %1982 = vmatpush3.bf16.msra.mxu0 %v1979_v11 }
  0x38   : > { %1700 = vmatmul.mubr.f32.gmra.mrb[8].mxu0 %v399_v54 }
  0x39   : > { %1702 = vmatprep.mubr.f32.mxu0 %v400_v55 }
  0x3c   : > { %1703 = vmatmul.mubr.f32.gmra.mrb[10].mxu0 %v401_v56 }
  0x3d   : > { %1705 = vmatprep.mubr.f32.mxu0 %v402_v57 }
  0x40   : > { %1706 = vmatmul.mubr.f32.gmra.mrb[12].mxu0 %v403_v58 }
  0x41   : > { %1708 = vmatprep.mubr.f32.mxu0 %v404_v59 }
  0x44   : > { %1709 = vmatmul.mubr.f32.gmra.mrb[14].mxu0 %v405_v60 }
  0xfb   : > { %v1689_v13 = vpop.f32.mrb[0].mxu0 }
  0xfc   : > { %v501_v14 = vadd.f32 %v1689_v13, %v1472_v12  ;;  %v495_v15 = vpop.f32.mrb[1].mxu0 }
  0xfd   : > { %v496_v16 = vadd.f32 %v1472_v12, %v495_v15 }
  0xfe   : > { %v575_v19 = vmax.f32 %v501_v14, 0.0 }
  0xff   : > { %v1692_v17 = vpop.f32.mrb[2].mxu0  ;;  %v574_v18 = vmax.f32 %v496_v16, 0.0 }
 0x100   : > { %v511_v20 = vadd.f32 %v1692_v17, %v1472_v12  ;;  %v505_v21 = vpop.f32.mrb[3].mxu0 }
 0x101   : > { %v506_v22 = vadd.f32 %v1472_v12, %v505_v21  ;;  %1743 = vmatprep.mubr.f32.mxu1 %v574_v18 }
 0x102   : > { %1744 = vmatmul.mubr.f32.vlgmr.msra.gmra.mrb[0].mxu1 %v575_v19  ;;  %v577_v25 = vmax.f32 %v511_v20, 0.0 }
 0x103   : > { %v576_v23 = vmax.f32 %v506_v22, 0.0  ;;  %v1695_v24 = vpop.f32.mrb[4].mxu0  ;;  %1986 = vmatpush3.bf16.msra.mxu1 %v1983_v0  ;;  %v1227_v0 = vld [vmem:[%s2473_s9 + $0x20] sm:$0xff] }
 0x104   : > { %v521_v26 = vadd.f32 %v1695_v24, %v1472_v12  ;;  %v515_v27 = vpop.f32.mrb[5].mxu0  ;;  %1988 = vmatprep.subr.bf16.mxu1 %v1987_v2 }
 0x105   : > { %v516_v28 = vadd.f32 %v1472_v12, %v515_v27  ;;  %1746 = vmatprep.mubr.f32.mxu1 %v576_v23 }
 0x106   : > { %1747 = vmatmul.mubr.f32.gmra.mrb[2].mxu1 %v577_v25  ;;  %v579_v31 = vmax.f32 %v521_v26, 0.0 }
 0x107   : > { %v578_v29 = vmax.f32 %v516_v28, 0.0  ;;  %v1698_v30 = vpop.f32.mrb[6].mxu0  ;;  %1990 = vmatpush3.bf16.msra.mxu1 %v1987_v2  ;;  %v2007_v2 = vpack.c.bf16 %v1228_v1, %v1227_v0  ;;  %v1237_v0 = vld [vmem:[%s2473_s9 + $0x70] sm:$0xff]  ;;  %v1238_v1 = vld [vmem:[%s2473_s9 + $0x78] sm:$0xff] }
 0x108   : > { %v531_v32 = vadd.f32 %v1698_v30, %v1472_v12  ;;  %v525_v33 = vpop.f32.mrb[7].mxu0  ;;  %1992 = vmatprep.subr.bf16.mxu1 %v1991_v5 }
 0x109   : > { %v526_v34 = vadd.f32 %v1472_v12, %v525_v33  ;;  %1749 = vmatprep.mubr.f32.mxu1 %v578_v29 }
 0x10a   : > { %1750 = vmatmul.mubr.f32.gmra.mrb[4].mxu1 %v579_v31  ;;  %v581_v37 = vmax.f32 %v531_v32, 0.0 }
 0x10b   : > { %v580_v35 = vmax.f32 %v526_v34, 0.0  ;;  %v1701_v36 = vpop.f32.mrb[8].mxu0  ;;  %1994 = vmatpush3.bf16.msra.mxu1 %v1991_v5  ;;  %v2347_v5 = vpack.c.bf16 %v1230_v4, %v1229_v3  ;;  %v1491_v3 = vld [vmem:[%s2472_s8] ss:$0 sm:$0xff] }
 0x10c   : > { %v541_v38 = vadd.f32 %v1701_v36, %v1472_v12  ;;  %v535_v39 = vpop.f32.mrb[9].mxu0  ;;  %1996 = vmatprep.subr.bf16.mxu1 %v1995_v8 }
 0x10d   : > { %v536_v40 = vadd.f32 %v1472_v12, %v535_v39  ;;  %1752 = vmatprep.mubr.f32.mxu1 %v580_v35 }
 0x10e   : > { %1753 = vmatmul.mubr.f32.gmra.mrb[6].mxu1 %v581_v37  ;;  %v583_v43 = vmax.f32 %v541_v38, 0.0 }
 0x10f   : > { %v582_v41 = vmax.f32 %v536_v40, 0.0  ;;  %v1704_v42 = vpop.f32.mrb[10].mxu0  ;;  %1998 = vmatpush3.bf16.msra.mxu1 %v1995_v8  ;;  %v2356_v8 = vpack.c.bf16 %v1232_v7, %v1231_v6 }
 0x110   : > { %v551_v44 = vadd.f32 %v1704_v42, %v1472_v12  ;;  %v545_v45 = vpop.f32.mrb[11].mxu0 }
 0x111   : > { %v546_v46 = vadd.f32 %v1472_v12, %v545_v45  ;;  %1755 = vmatprep.mubr.f32.mxu1 %v582_v41 }
 0x112   : > { %1756 = vmatmul.mubr.f32.gmra.mrb[8].mxu1 %v583_v43  ;;  %v585_v49 = vmax.f32 %v551_v44, 0.0 }
 0x113   : > { %v584_v47 = vmax.f32 %v546_v46, 0.0  ;;  %v1707_v48 = vpop.f32.mrb[12].mxu0 }
 0x114   : > { %v561_v50 = vadd.f32 %v1707_v48, %v1472_v12  ;;  %v555_v51 = vpop.f32.mrb[13].mxu0 }
 0x115   : > { %v556_v52 = vadd.f32 %v1472_v12, %v555_v51  ;;  %1758 = vmatprep.mubr.f32.mxu1 %v584_v47 }
 0x116   : > { %1759 = vmatmul.mubr.f32.gmra.mrb[10].mxu1 %v585_v49  ;;  %v587_v55 = vmax.f32 %v561_v50, 0.0 }
 0x117   : > { %v586_v53 = vmax.f32 %v556_v52, 0.0  ;;  %v1710_v54 = vpop.f32.mrb[14].mxu0 }
 0x118   : > { %v571_v56 = vadd.f32 %v1710_v54, %v1472_v12  ;;  %v565_v57 = vpop.f32.mrb[15].mxu0 }
 0x119   : > { %v566_v58 = vadd.f32 %v1472_v12, %v565_v57  ;;  %1761 = vmatprep.mubr.f32.mxu1 %v586_v53 }
 0x11a   : > { %1762 = vmatmul.mubr.f32.gmra.mrb[12].mxu1 %v587_v55  ;;  %v589_v60 = vmax.f32 %v571_v56, 0.0 }
 0x11b   : > { %v588_v59 = vmax.f32 %v566_v58, 0.0  ;;  %v1223_v58 = vld [vmem:[%s2473_s9] sm:$0xff] }
 0x11d   : > { %1764 = vmatprep.mubr.f32.mxu1 %v588_v59  ;;  %v1224_v59 = vld [vmem:[%s2473_s9 + $0x8] sm:$0xff] }
 0x11e   : > { %1765 = vmatmul.mubr.f32.gmra.mrb[14].mxu1 %v589_v60  ;;  %v1225_v60 = vld [vmem:[%s2473_s9 + $0x10] sm:$0xff]  ;;  %v1999_v61 = vpack.c.bf16 %v1224_v59, %v1223_v58 }
 0x11f   : > { %v2003_v63 = vpack.c.bf16 %v1226_v62, %v1225_v60 }
 0x120   : > { %2000 = vmatprep.subr.bf16.mxu0 %v1999_v61  ;;  %2031 = vmatprep.subr.bf16.mxu1 %v1999_v61 }
 0x1d5   : > { %v1745_v10 = vpop.f32.mrb[0].mxu1 }
 0x1d6   : > { %v685_v11 = vadd.f32 %v1745_v10, %v1473_v9  ;;  %v679_v12 = vpop.f32.mrb[1].mxu1  ;;  %v1234_v10 = vld [vmem:[%s2473_s9 + $0x58] sm:$0xff] }
 0x1d7   : > { %v680_v13 = vadd.f32 %v1473_v9, %v679_v12  ;;  %v1235_v12 = vld [vmem:[%s2473_s9 + $0x60] sm:$0xff] }
 0x1d8   : > { %v759_v16 = vmax.f32 %v685_v11, 0.0 }
 0x1d9   : > { %v758_v14 = vmax.f32 %v680_v13, 0.0  ;;  %v1748_v15 = vpop.f32.mrb[2].mxu1  ;;  %v1236_v13 = vld [vmem:[%s2473_s9 + $0x68] sm:$0xff] }
 0x1da   : > { %v695_v17 = vadd.f32 %v1748_v15, %v1473_v9  ;;  %v689_v18 = vpop.f32.mrb[3].mxu1  ;;  %v2384_v15 = vld [vmem:[%s2470_s6] ss:$0 sm:$0xff] }
 0x1db   : > { %v690_v19 = vadd.f32 %v1473_v9, %v689_v18  ;;  %1783 = vmatprep.mubr.msk.f32.mxu0 %vm789_vm0, %v758_v14  ;;  %v2376_v14 = vpack.c.bf16 %v1236_v13, %v1235_v12 }
 0x1dc   : > { %1784 = vmatmul.mubr.msk.f32.vlgmr.msra.gmra.mrb[16].mxu0 %vm789_vm0, %v759_v16  ;;  %v761_v22 = vmax.f32 %v695_v17, 0.0 }
 0x1dd   : > { %v760_v20 = vmax.f32 %v690_v19, 0.0  ;;  %v1751_v21 = vpop.f32.mrb[4].mxu1  ;;  %2002 = vmatpush3.bf16.msra.mxu0 %v1999_v61 }
 0x1de   : > { %v705_v23 = vadd.f32 %v1751_v21, %v1473_v9  ;;  %v699_v24 = vpop.f32.mrb[5].mxu1  ;;  %2004 = vmatprep.subr.bf16.mxu0 %v2003_v63 }
 0x1df   : > { %v700_v25 = vadd.f32 %v1473_v9, %v699_v24  ;;  %1786 = vmatprep.mubr.msk.f32.mxu0 %vm789_vm0, %v760_v20 }
 0x1e0   : > { %1787 = vmatmul.mubr.msk.f32.gmra.mrb[18].mxu0 %vm789_vm0, %v761_v22  ;;  %v763_v28 = vmax.f32 %v705_v23, 0.0 }
 0x1e1   : > { %v762_v26 = vmax.f32 %v700_v25, 0.0  ;;  %v1754_v27 = vpop.f32.mrb[6].mxu1  ;;  %2006 = vmatpush3.bf16.msra.mxu0 %v2003_v63 }
 0x1e2   : > { %v715_v29 = vadd.f32 %v1754_v27, %v1473_v9  ;;  %v709_v30 = vpop.f32.mrb[7].mxu1  ;;  %2008 = vmatprep.subr.bf16.mxu0 %v2007_v2 }
 0x1e3   : > { %v710_v31 = vadd.f32 %v1473_v9, %v709_v30  ;;  %1789 = vmatprep.mubr.msk.f32.mxu0 %vm789_vm0, %v762_v26 }
 0x1e4   : > { %1790 = vmatmul.mubr.msk.f32.gmra.mrb[20].mxu0 %vm789_vm0, %v763_v28  ;;  %v765_v34 = vmax.f32 %v715_v29, 0.0 }
 0x1e5   : > { %v764_v32 = vmax.f32 %v710_v31, 0.0  ;;  %v1757_v33 = vpop.f32.mrb[8].mxu1  ;;  %2010 = vmatpush3.bf16.msra.mxu0 %v2007_v2 }
 0x1e6   : > { %v725_v35 = vadd.f32 %v1757_v33, %v1473_v9  ;;  %v719_v36 = vpop.f32.mrb[9].mxu1  ;;  %2012 = vmatprep.subr.bf16.mxu0 %v2347_v5 }
 0x1e7   : > { %v720_v37 = vadd.f32 %v1473_v9, %v719_v36  ;;  %1792 = vmatprep.mubr.msk.f32.mxu0 %vm789_vm0, %v764_v32 }
 0x1e8   : > { %1793 = vmatmul.mubr.msk.f32.gmra.mrb[22].mxu0 %vm789_vm0, %v765_v34  ;;  %v767_v40 = vmax.f32 %v725_v35, 0.0 }
 0x1e9   : > { %v766_v38 = vmax.f32 %v720_v37, 0.0  ;;  %v1760_v39 = vpop.f32.mrb[10].mxu1  ;;  %2014 = vmatpush3.bf16.msra.mxu0 %v2347_v5 }
 0x1ea   : > { %v735_v41 = vadd.f32 %v1760_v39, %v1473_v9  ;;  %v729_v42 = vpop.f32.mrb[11].mxu1  ;;  %2016 = vmatprep.subr.bf16.mxu0 %v2356_v8 }
 0x1eb   : > { %v730_v43 = vadd.f32 %v1473_v9, %v729_v42  ;;  %1795 = vmatprep.mubr.msk.f32.mxu0 %vm789_vm0, %v766_v38 }
 0x1ec   : > { %1796 = vmatmul.mubr.msk.f32.gmra.mrb[24].mxu0 %vm789_vm0, %v767_v40  ;;  %v769_v46 = vmax.f32 %v735_v41, 0.0 }
 0x1ed   : > { %v768_v44 = vmax.f32 %v730_v43, 0.0  ;;  %v1763_v45 = vpop.f32.mrb[12].mxu1  ;;  %2018 = vmatpush3.bf16.msra.mxu0 %v2356_v8 }
 0x1ee   : > { %v745_v47 = vadd.f32 %v1763_v45, %v1473_v9  ;;  %v739_v48 = vpop.f32.mrb[13].mxu1 }
 0x1ef   : > { %v740_v49 = vadd.f32 %v1473_v9, %v739_v48  ;;  %1798 = vmatprep.mubr.msk.f32.mxu0 %vm789_vm0, %v768_v44 }
 0x1f0   : > { %1799 = vmatmul.mubr.msk.f32.gmra.mrb[26].mxu0 %vm789_vm0, %v769_v46  ;;  %v771_v52 = vmax.f32 %v745_v47, 0.0 }
 0x1f1   : > { %v770_v50 = vmax.f32 %v740_v49, 0.0  ;;  %v1766_v51 = vpop.f32.mrb[14].mxu1 }
 0x1f2   : > { %v755_v53 = vadd.f32 %v1766_v51, %v1473_v9  ;;  %v749_v54 = vpop.f32.mrb[15].mxu1 }
 0x1f3   : > { %v750_v55 = vadd.f32 %v1473_v9, %v749_v54  ;;  %1801 = vmatprep.mubr.msk.f32.mxu0 %vm789_vm0, %v770_v50  ;;  %v1233_v9 = vld [vmem:[%s2473_s9 + $0x50] sm:$0xff] }
 0x1f4   : > { %1802 = vmatmul.mubr.msk.f32.gmra.mrb[28].mxu0 %vm789_vm0, %v771_v52  ;;  %v773_v57 = vmax.f32 %v755_v53, 0.0  ;;  %v2366_v11 = vpack.c.bf16 %v1234_v10, %v1233_v9 }
 0x1f5   : > { %v772_v56 = vmax.f32 %v750_v55, 0.0 }
 0x1f6   : > { %2020 = vmatprep.subr.bf16.mxu0 %v2366_v11 }
 0x1f7   : > { %1804 = vmatprep.mubr.msk.f32.mxu0 %vm789_vm0, %v772_v56  ;;  %2022 = vmatpush3.bf16.msra.mxu0 %v2366_v11 }
 0x1f8   : > { %1805 = vmatmul.mubr.msk.f32.gmra.mrb[30].mxu0 %vm789_vm0, %v773_v57  ;;  %2024 = vmatprep.subr.bf16.mxu0 %v2376_v14 }
 0x1fb   : > { %2026 = vmatpush3.bf16.msra.mxu0 %v2376_v14 }
 0x2af   : > { %v1785_v16 = vpop.f32.mrb[16].mxu0 }
 0x2b0   : > { %v910_v17 = vadd.f32 %v1785_v16, %v2384_v15  ;;  %v904_v18 = vpop.f32.mrb[17].mxu0 }
 0x2b1   : > { %v905_v19 = vadd.f32 %v2384_v15, %v904_v18 }
 0x2b2   : > { %v984_v22 = vmax.f32 %v910_v17, 0.0 }
 0x2b3   : > { %v983_v20 = vmax.f32 %v905_v19, 0.0  ;;  %v1788_v21 = vpop.f32.mrb[18].mxu0 }
 0x2b4   : > { %v920_v23 = vadd.f32 %v1788_v21, %v2384_v15  ;;  %v914_v24 = vpop.f32.mrb[19].mxu0 }
 0x2b5   : > { %v915_v25 = vadd.f32 %v2384_v15, %v914_v24  ;;  %1823 = vmatprep.mubr.msk.f32.mxu1 %vm789_vm0, %v983_v20 }
 0x2b6   : > { %1824 = vmatmul.mubr.msk.f32.vlgmr.msra.gmra.mrb[16].mxu1 %vm789_vm0, %v984_v22  ;;  %v986_v28 = vmax.f32 %v920_v23, 0.0 }
 0x2b7   : > { %v985_v26 = vmax.f32 %v915_v25, 0.0  ;;  %v1791_v27 = vpop.f32.mrb[20].mxu0  ;;  %2039 = vmatpush3.bf16.msra.mxu1 %v1999_v61 }
 0x2b8   : > { %v930_v29 = vadd.f32 %v1791_v27, %v2384_v15  ;;  %v924_v30 = vpop.f32.mrb[21].mxu0  ;;  %2032 = vmatprep.subr.bf16.mxu1 %v2003_v63 }
 0x2b9   : > { %v925_v31 = vadd.f32 %v2384_v15, %v924_v30  ;;  %1826 = vmatprep.mubr.msk.f32.mxu1 %vm789_vm0, %v985_v26 }
 0x2ba   : > { %1827 = vmatmul.mubr.msk.f32.gmra.mrb[18].mxu1 %vm789_vm0, %v986_v28  ;;  %v988_v34 = vmax.f32 %v930_v29, 0.0 }
 0x2bb   : > { %v987_v32 = vmax.f32 %v925_v31, 0.0  ;;  %v1794_v33 = vpop.f32.mrb[22].mxu0  ;;  %2040 = vmatpush3.bf16.msra.mxu1 %v2003_v63 }
 0x2bc   : > { %v940_v35 = vadd.f32 %v1794_v33, %v2384_v15  ;;  %v934_v36 = vpop.f32.mrb[23].mxu0  ;;  %2033 = vmatprep.subr.bf16.mxu1 %v2007_v2 }
 0x2bd   : > { %v935_v37 = vadd.f32 %v2384_v15, %v934_v36  ;;  %1829 = vmatprep.mubr.msk.f32.mxu1 %vm789_vm0, %v987_v32 }
 0x2be   : > { %1830 = vmatmul.mubr.msk.f32.gmra.mrb[20].mxu1 %vm789_vm0, %v988_v34  ;;  %v990_v40 = vmax.f32 %v940_v35, 0.0 }
 0x2bf   : > { %v989_v38 = vmax.f32 %v935_v37, 0.0  ;;  %v1797_v39 = vpop.f32.mrb[24].mxu0  ;;  %2041 = vmatpush3.bf16.msra.mxu1 %v2007_v2  ;;  %v2027_v2 = vpack.c.bf16 %v1238_v1, %v1237_v0 }
 0x2c0   : > { %v950_v41 = vadd.f32 %v1797_v39, %v2384_v15  ;;  %v944_v42 = vpop.f32.mrb[25].mxu0  ;;  %2034 = vmatprep.subr.bf16.mxu1 %v2347_v5 }
 0x2c1   : > { %v945_v43 = vadd.f32 %v2384_v15, %v944_v42  ;;  %1832 = vmatprep.mubr.msk.f32.mxu1 %vm789_vm0, %v989_v38  ;;  %2028 = vmatprep.subr.bf16.mxu0 %v2027_v2 }
 0x2c2   : > { %1833 = vmatmul.mubr.msk.f32.gmra.mrb[22].mxu1 %vm789_vm0, %v990_v40  ;;  %v992_v46 = vmax.f32 %v950_v41, 0.0  ;;  %2030 = vmatpush3.bf16.msra.mxu0 %v2027_v2 }
 0x2c3   : > { %v991_v44 = vmax.f32 %v945_v43, 0.0  ;;  %v1800_v45 = vpop.f32.mrb[26].mxu0  ;;  %2042 = vmatpush3.bf16.msra.mxu1 %v2347_v5 }
 0x2c4   : > { %v960_v47 = vadd.f32 %v1800_v45, %v2384_v15  ;;  %v954_v48 = vpop.f32.mrb[27].mxu0  ;;  %2035 = vmatprep.subr.bf16.mxu1 %v2356_v8 }
 0x2c5   : > { %v955_v49 = vadd.f32 %v2384_v15, %v954_v48  ;;  %1835 = vmatprep.mubr.msk.f32.mxu1 %vm789_vm0, %v991_v44 }
 0x2c6   : > { %1836 = vmatmul.mubr.msk.f32.gmra.mrb[24].mxu1 %vm789_vm0, %v992_v46  ;;  %v994_v52 = vmax.f32 %v960_v47, 0.0 }
 0x2c7   : > { %v993_v50 = vmax.f32 %v955_v49, 0.0  ;;  %v1803_v51 = vpop.f32.mrb[28].mxu0  ;;  %2043 = vmatpush3.bf16.msra.mxu1 %v2356_v8 }
 0x2c8   : > { %v970_v53 = vadd.f32 %v1803_v51, %v2384_v15  ;;  %v964_v54 = vpop.f32.mrb[29].mxu0  ;;  %2036 = vmatprep.subr.bf16.mxu1 %v2366_v11 }
 0x2c9   : > { %v965_v55 = vadd.f32 %v2384_v15, %v964_v54  ;;  %1838 = vmatprep.mubr.msk.f32.mxu1 %vm789_vm0, %v993_v50 }
 0x2ca   : > { %1839 = vmatmul.mubr.msk.f32.gmra.mrb[26].mxu1 %vm789_vm0, %v994_v52  ;;  %v996_v58 = vmax.f32 %v970_v53, 0.0  ;;  %v1508_v52 = vld [vmem:[%s2474_s10] ss:$0 sm:$0xff] }
 0x2cb   : > { %v995_v56 = vmax.f32 %v965_v55, 0.0  ;;  %v1806_v57 = vpop.f32.mrb[30].mxu0  ;;  %2044 = vmatpush3.bf16.msra.mxu1 %v2366_v11 }
 0x2cc   : > { %v980_v59 = vadd.f32 %v1806_v57, %v2384_v15  ;;  %v974_v60 = vpop.f32.mrb[31].mxu0  ;;  %2037 = vmatprep.subr.bf16.mxu1 %v2376_v14 }
 0x2cd   : > { %v975_v61 = vadd.f32 %v2384_v15, %v974_v60  ;;  %1841 = vmatprep.mubr.msk.f32.mxu1 %vm789_vm0, %v995_v56 }
 0x2ce   : > { %1842 = vmatmul.mubr.msk.f32.gmra.mrb[28].mxu1 %vm789_vm0, %v996_v58  ;;  %v998_v63 = vmax.f32 %v980_v59, 0.0 }
 0x2cf   : > { %v997_v62 = vmax.f32 %v975_v61, 0.0  ;;  %2045 = vmatpush3.bf16.msra.mxu1 %v2376_v14 }
 0x2d0   : > { %2038 = vmatprep.subr.bf16.mxu1 %v2027_v2 }
 0x2d1   : > { %1844 = vmatprep.mubr.msk.f32.mxu1 %vm789_vm0, %v997_v62 }
 0x2d2   : > { %1845 = vmatmul.mubr.msk.f32.gmra.mrb[30].mxu1 %vm789_vm0, %v998_v63 }
 0x2d3   : > { %2046 = vmatpush3.bf16.msra.mxu1 %v2027_v2 }
 0x389   : > { %v1825_v4 = vpop.f32.mrb[16].mxu1 }
 0x38a   : > { %v1134_v5 = vadd.f32 %v1825_v4, %v1491_v3  ;;  %v1128_v6 = vpop.f32.mrb[17].mxu1 }
 0x38b   : > { %v1129_v7 = vadd.f32 %v1491_v3, %v1128_v6 }
 0x38c   : > { %v1208_v10 = vmax.f32 %v1134_v5, 0.0 }
 0x38d   : > { %v1207_v8 = vmax.f32 %v1129_v7, 0.0  ;;  %v1828_v9 = vpop.f32.mrb[18].mxu1 }
 0x38e   : > { %v1144_v11 = vadd.f32 %v1828_v9, %v1491_v3  ;;  %v1138_v12 = vpop.f32.mrb[19].mxu1 }
 0x38f   : > { %v1139_v13 = vadd.f32 %v1491_v3, %v1138_v12  ;;  %1879 = vmatprep.mubr.f32.mxu0 %v1207_v8 }
 0x390   : > { %1880 = vmatmul.mubr.f32.vlgmr.msra.gmra.mrb[32].mxu0 %v1208_v10  ;;  %v1210_v16 = vmax.f32 %v1144_v11, 0.0 }
 0x391   : > { %v1209_v14 = vmax.f32 %v1139_v13, 0.0  ;;  %v1831_v15 = vpop.f32.mrb[20].mxu1 }
 0x392   : > { %v1154_v17 = vadd.f32 %v1831_v15, %v1491_v3  ;;  %v1148_v18 = vpop.f32.mrb[21].mxu1 }
 0x393   : > { %v1149_v19 = vadd.f32 %v1491_v3, %v1148_v18  ;;  %1882 = vmatprep.mubr.f32.mxu0 %v1209_v14 }
 0x394   : > { %1883 = vmatmul.mubr.f32.gmra.mrb[34].mxu0 %v1210_v16  ;;  %v1212_v22 = vmax.f32 %v1154_v17, 0.0 }
 0x395   : > { %v1211_v20 = vmax.f32 %v1149_v19, 0.0  ;;  %v1834_v21 = vpop.f32.mrb[22].mxu1 }
 0x396   : > { %v1164_v23 = vadd.f32 %v1834_v21, %v1491_v3  ;;  %v1158_v24 = vpop.f32.mrb[23].mxu1 }
 0x397   : > { %v1159_v25 = vadd.f32 %v1491_v3, %v1158_v24  ;;  %1885 = vmatprep.mubr.f32.mxu0 %v1211_v20 }
 0x398   : > { %1886 = vmatmul.mubr.f32.gmra.mrb[36].mxu0 %v1212_v22  ;;  %v1214_v28 = vmax.f32 %v1164_v23, 0.0 }
 0x399   : > { %v1213_v26 = vmax.f32 %v1159_v25, 0.0  ;;  %v1837_v27 = vpop.f32.mrb[24].mxu1 }
 0x39a   : > { %v1174_v29 = vadd.f32 %v1837_v27, %v1491_v3  ;;  %v1168_v30 = vpop.f32.mrb[25].mxu1 }
 0x39b   : > { %v1169_v31 = vadd.f32 %v1491_v3, %v1168_v30  ;;  %1888 = vmatprep.mubr.f32.mxu0 %v1213_v26 }
 0x39c   : > { %1889 = vmatmul.mubr.f32.gmra.mrb[38].mxu0 %v1214_v28  ;;  %v1216_v34 = vmax.f32 %v1174_v29, 0.0 }
 0x39d   : > { %v1215_v32 = vmax.f32 %v1169_v31, 0.0  ;;  %v1840_v33 = vpop.f32.mrb[26].mxu1 }
 0x39e   : > { %v1184_v35 = vadd.f32 %v1840_v33, %v1491_v3  ;;  %v1178_v36 = vpop.f32.mrb[27].mxu1 }
 0x39f   : > { %v1179_v37 = vadd.f32 %v1491_v3, %v1178_v36  ;;  %1891 = vmatprep.mubr.f32.mxu1 %v1215_v32 }
 0x3a0   : > { %1892 = vmatmul.mubr.f32.vlgmr.msra.gmra.mrb[32].mxu1 %v1216_v34  ;;  %v1218_v40 = vmax.f32 %v1184_v35, 0.0 }
 0x3a1   : > { %v1217_v38 = vmax.f32 %v1179_v37, 0.0  ;;  %v1843_v39 = vpop.f32.mrb[28].mxu1 }
 0x3a2   : > { %v1194_v41 = vadd.f32 %v1843_v39, %v1491_v3  ;;  %v1188_v42 = vpop.f32.mrb[29].mxu1 }
 0x3a3   : > { %v1189_v43 = vadd.f32 %v1491_v3, %v1188_v42  ;;  %1894 = vmatprep.mubr.f32.mxu1 %v1217_v38 }
 0x3a4   : > { %1895 = vmatmul.mubr.f32.gmra.mrb[34].mxu1 %v1218_v40  ;;  %v1220_v46 = vmax.f32 %v1194_v41, 0.0 }
 0x3a5   : > { %v1219_v44 = vmax.f32 %v1189_v43, 0.0  ;;  %v1846_v45 = vpop.f32.mrb[30].mxu1 }
 0x3a6   : > { %v1204_v47 = vadd.f32 %v1846_v45, %v1491_v3  ;;  %v1198_v48 = vpop.f32.mrb[31].mxu1 }
 0x3a7   : > { %v1199_v49 = vadd.f32 %v1491_v3, %v1198_v48  ;;  %1897 = vmatprep.mubr.f32.mxu1 %v1219_v44 }
 0x3a8   : > { %1898 = vmatmul.mubr.f32.gmra.mrb[36].mxu1 %v1220_v46  ;;  %v1222_v51 = vmax.f32 %v1204_v47, 0.0 }
 0x3a9   : > { %v1221_v50 = vmax.f32 %v1199_v49, 0.0 }
 0x3ab   : > { %1900 = vmatprep.mubr.f32.mxu1 %v1221_v50 }
 0x3ac   : > { %1901 = vmatmul.mubr.f32.gmra.mrb[38].mxu1 %v1222_v51 }
 0x463   : > { %v1881_v53 = vpop.f32.mrb[32].mxu0 }
 0x464   : > { %v1318_v54 = vadd.f32 %v1881_v53, %v1508_v52  ;;  %v1312_v55 = vpop.f32.mrb[33].mxu0 }
 0x465   : > { %v1313_v56 = vadd.f32 %v1508_v52, %v1312_v55 }
 0x466   : > { %1392 = vst [vmem:[%s2443_s20 + $0x8] sm:$0xff] %v1318_v54 }
 0x467   : > { %1391 = vst [vmem:[%s2443_s20] sm:$0xff] %v1313_v56  ;;  %v1884_v57 = vpop.f32.mrb[34].mxu0 }
 0x468   : > { %v1328_v58 = vadd.f32 %v1884_v57, %v1508_v52  ;;  %v1322_v59 = vpop.f32.mrb[35].mxu0 }
 0x469   : > { %v1323_v60 = vadd.f32 %v1508_v52, %v1322_v59 }
 0x46a   : > { %1394 = vst [vmem:[%s2443_s20 + $0x18] sm:$0xff] %v1328_v58 }
 0x46b   : > { %1393 = vst [vmem:[%s2443_s20 + $0x10] sm:$0xff] %v1323_v60  ;;  %v1887_v61 = vpop.f32.mrb[36].mxu0 }
 0x46c   : > { %v1338_v62 = vadd.f32 %v1887_v61, %v1508_v52  ;;  %v1332_v63 = vpop.f32.mrb[37].mxu0 }
 0x46d   : > { %v1333_v0 = vadd.f32 %v1508_v52, %v1332_v63 }
 0x46e   : > { %1396 = vst [vmem:[%s2443_s20 + $0x28] sm:$0xff] %v1338_v62 }
 0x46f   : > { %1395 = vst [vmem:[%s2443_s20 + $0x20] sm:$0xff] %v1333_v0  ;;  %v1890_v1 = vpop.f32.mrb[38].mxu0 }
 0x470   : > { %v1348_v2 = vadd.f32 %v1890_v1, %v1508_v52  ;;  %v1342_v3 = vpop.f32.mrb[39].mxu0 }
 0x471   : > { %v1343_v4 = vadd.f32 %v1508_v52, %v1342_v3 }
 0x472   : > { %1398 = vst [vmem:[%s2443_s20 + $0x38] sm:$0xff] %v1348_v2 }
 0x473   : > { %1397 = vst [vmem:[%s2443_s20 + $0x30] sm:$0xff] %v1343_v4  ;;  %v1893_v5 = vpop.f32.mrb[32].mxu1 }
 0x474   : > { %v1358_v6 = vadd.f32 %v1893_v5, %v1508_v52  ;;  %v1352_v7 = vpop.f32.mrb[33].mxu1 }
 0x475   : > { %v1353_v8 = vadd.f32 %v1508_v52, %v1352_v7 }
 0x476   : > { %1400 = vst [vmem:[%s2443_s20 + $0x48] sm:$0xff] %v1358_v6 }
 0x477   : > { %1399 = vst [vmem:[%s2443_s20 + $0x40] sm:$0xff] %v1353_v8  ;;  %v1896_v9 = vpop.f32.mrb[34].mxu1 }
 0x478   : > { %v1368_v10 = vadd.f32 %v1896_v9, %v1508_v52  ;;  %v1362_v11 = vpop.f32.mrb[35].mxu1 }
 0x479   : > { %v1363_v12 = vadd.f32 %v1508_v52, %v1362_v11 }
 0x47a   : > { %1402 = vst [vmem:[%s2443_s20 + $0x58] sm:$0xff] %v1368_v10 }
 0x47b   : > { %1401 = vst [vmem:[%s2443_s20 + $0x50] sm:$0xff] %v1363_v12  ;;  %v1899_v13 = vpop.f32.mrb[36].mxu1 }
 0x47c   : > { %v1378_v14 = vadd.f32 %v1899_v13, %v1508_v52  ;;  %v1372_v15 = vpop.f32.mrb[37].mxu1 }
 0x47d   : > { %v1373_v16 = vadd.f32 %v1508_v52, %v1372_v15 }
 0x47e   : > { %1404 = vst [vmem:[%s2443_s20 + $0x68] sm:$0xff] %v1378_v14 }
 0x47f   : > { %1403 = vst [vmem:[%s2443_s20 + $0x60] sm:$0xff] %v1373_v16  ;;  %v1902_v17 = vpop.f32.mrb[38].mxu1 }
 0x480   : > { %v1388_v18 = vadd.f32 %v1902_v17, %v1508_v52  ;;  %v1382_v19 = vpop.f32.mrb[39].mxu1 }
 0x481   : > { %v1383_v20 = vadd.f32 %v1508_v52, %v1382_v19 }
 0x482   : > { %1406 = vst [vmem:[%s2443_s20 + $0x78] sm:$0xff] %v1388_v18 }
 0x483   : > { %1405 = vst [vmem:[%s2443_s20 + $0x70] sm:$0xff] %v1383_v20 }
 0x484 PF: > { %s21_s17 = sadd.s32 1, %s2061_s17  }
 0x485   : > { %p18_p4 = scmp.ge.s32.totalorder %s21_s17, 4  }
 0x487   :  { %20 = sbr.rel (!%p18_p4) target bundleno = 1 (0x1), region = 94 }

</bundles_post_ra>
